<compile_context>
chip_gen: v5e
topology: v5e:2x2
jax: 0.10.0
libtpu: 0.0.40
codegen_flags: <defaults>
</compile_context>

<pallas_src>
import functools

import jax
import jax.numpy as jnp
from jax import lax
from jax.experimental import pallas as pl
from jax.experimental.pallas import tpu as pltpu


def _round_up(x, m):
    return (x + m - 1) // m * m


def _pick_group_size(B, NBp, max_group_rows=512):
    """Molecules per grid step.

    Keep the block-diagonal AGG width G*NBp <= max_group_rows (dense AGG cost is
    O(G^2)), and keep at least two grid steps when B >= 2 so the two v7x
    TensorCores both get work under dimension_semantics=("parallel",).
    """
    g = max(1, min(B, max_group_rows // max(NBp, 1)))
    if B >= 2:
        g = min(g, -(-B // 2))  # at least two groups
    return max(1, g)


def _vmem_limit_bytes():
    """Per-generation VMEM budget: ~3/4 of physical, capped at 100 MiB."""
    cap = None
    try:
        info = pltpu.get_tpu_info()
        cap = getattr(info, "vmem_capacity_bytes", None)
    except Exception:
        cap = None
    if cap is None:
        cap = 64 * 1024 * 1024  # conservative (v7x per-TC VMEM)
    return int(min(cap * 3 // 4, 100 * 1024 * 1024))


def dmpnn_kernel(f_atoms_ref, f_bonds_ref, agg_ref, a2b_ref,
                 wi_ref, bi_ref, wh_ref, bh_ref, wo_a_ref, wo_m_ref, bo_ref,
                 out_ref, *, num_layer):
    """One molecule-group per grid step; all refs are whole VMEM blocks.

    f_atoms [GA,AF] bf16, f_bonds [GB,BF] bf16, agg [GB,GB] bf16 (exact small
    ints, block-diagonal per molecule), a2b [GA,GB] bf16, weights bf16,
    biases f32, out [GA,E] f32.
    """
    # input = W_i(f_bonds); message = relu(input)   (bf16 MXU, f32 accumulate)
    inp = jnp.dot(f_bonds_ref[...], wi_ref[...],
                  preferred_element_type=jnp.float32) + bi_ref[...]
    message = jnp.maximum(inp, 0.0)                      # f32 [GB, E]

    # Hoist loop-invariant operands out of the message-passing loop.
    agg = agg_ref[...]                                   # bf16 [GB, GB]
    wh = wh_ref[...]                                     # bf16 [E, E]
    bh = bh_ref[...]                                     # f32  [1, E]

    def layer(_, msg):
        # a_message[b2a] - message[b2revb]  ==  AGG @ message  (one MXU matmul)
        m = jnp.dot(agg, msg.astype(jnp.bfloat16),
                    preferred_element_type=jnp.float32)
        # message = relu(input + W_h(message))
        m = jnp.dot(m.astype(jnp.bfloat16), wh,
                    preferred_element_type=jnp.float32) + bh
        return jnp.maximum(inp + m, 0.0)
        # TODO(synk): train-mode F.dropout would need pltpu.prng_random_bits;
        # eval mode (training=False) dropout is the identity, so it is omitted.

    if num_layer - 1 <= 4:           # shallow: static unroll (LLO sees whole body)
        for _ in range(num_layer - 1):
            message = layer(0, message)
    else:                            # deep: bounded live ranges / code size
        message = lax.fori_loop(0, num_layer - 1, layer, message)

    # Readout: a_message = sum over incoming bonds == A2B @ message
    a_message = jnp.dot(a2b_ref[...], message.astype(jnp.bfloat16),
                        preferred_element_type=jnp.float32)          # [GA, E]
    # atom_hiddens = relu(W_o(cat([f_atoms, a_message]))), split into two matmuls.
    hidden = (jnp.dot(f_atoms_ref[...], wo_a_ref[...],
                      preferred_element_type=jnp.float32)
              + jnp.dot(a_message.astype(jnp.bfloat16), wo_m_ref[...],
                        preferred_element_type=jnp.float32)
              + bo_ref[...])
    out_ref[...] = jnp.maximum(hidden, 0.0)


def dmpnn_forward(f_atoms, f_bonds, a2b, b2a, b2revb, params, num_layer):
    """Batched DMPNN forward.

    f_atoms [B,NA,AF] f32, f_bonds [B,NB,BF] f32, a2b [B,NA,MAX_NB] i32,
    b2a [B,NB] i32, b2revb [B,NB] i32.  Returns atom hiddens [B,NA,emb_dim] f32.
    """
    B, NA, AF = f_atoms.shape
    _, NB, BF = f_bonds.shape
    E = params["wi"].shape[1]

    # ---- padding: bf16 rows -> x16 (2 rows / sublane), lane dims -> x128 --------
    NAp, NBp = _round_up(NA, 16), _round_up(NB, 16)
    AFp, BFp, Ep = _round_up(AF, 128), _round_up(BF, 128), _round_up(E, 128)

    # ---- molecule grouping (MXU M-fill + per-step overhead amortisation) --------
    G = _pick_group_size(B, NBp)
    Bg = _round_up(B, G)
    num_groups = Bg // G
    GA, GB = G * NAp, G * NBp

    # ---- host-side graph-structure matrices, built directly into padded shapes --
    def build_mats(a2b_i, b2a_i, b2revb_i):
        # A2B [NAp,NBp]: 1 where bond feeds atom (duplicate indices sum).
        a2b_mat = jnp.zeros((NAp, NBp), jnp.float32).at[
            jnp.arange(NA)[:, None], a2b_i].add(1.0)
        # AGG = B2A @ A2B - REV : [NBp, NBp]
        agg = jnp.zeros((NBp, NBp), jnp.float32).at[:NB].set(a2b_mat[b2a_i])
        agg = agg.at[jnp.arange(NB), b2revb_i].add(-1.0)
        # Small-integer entries are exact in bf16.
        return a2b_mat.astype(jnp.bfloat16), agg.astype(jnp.bfloat16)

    a2b_mats, agg_mats = jax.vmap(build_mats)(a2b, b2a, b2revb)

    def pad_batch(x):
        if Bg == B:
            return x
        pad = jnp.zeros((Bg - B,) + x.shape[1:], x.dtype)
        return jnp.concatenate([x, pad], axis=0)

    def block_diag(mats):
        # [num_groups, G, R, C] -> [num_groups, G*R, G*C] (per-group block diag)
        ng, g, r, c = mats.shape
        eye = jnp.eye(g, dtype=mats.dtype)
        bd = mats[:, :, None, :, :] * eye[None, :, :, None, None]   # [ng,G,G,R,C]
        return bd.transpose(0, 1, 3, 2, 4).reshape(ng, g * r, g * c)

    a2b_grp = block_diag(pad_batch(a2b_mats).reshape(num_groups, G, NAp, NBp))
    agg_grp = block_diag(pad_batch(agg_mats).reshape(num_groups, G, NBp, NBp))

    def pad_feats(x, rp, cp):
        # [B, R, C] f32 -> [num_groups, G*rp, cp] bf16, zero-padded
        Bx, R, C = x.shape
        out = jnp.zeros((Bg, rp, cp), jnp.bfloat16)
        out = out.at[:Bx, :R, :C].set(x.astype(jnp.bfloat16))
        return out.reshape(num_groups, G * rp, cp)

    f_atoms_p = pad_feats(f_atoms, NAp, AFp)
    f_bonds_p = pad_feats(f_bonds, NBp, BFp)

    def pad2(x, r, c, dtype):
        out = jnp.zeros((r, c), dtype)
        return out.at[:x.shape[0], :x.shape[1]].set(x.astype(dtype))

    wi_p = pad2(params["wi"], BFp, Ep, jnp.bfloat16)
    wh_p = pad2(params["wh"], Ep, Ep, jnp.bfloat16)
    wo_a_p = pad2(params["wo_a"], AFp, Ep, jnp.bfloat16)
    wo_m_p = pad2(params["wo_m"], Ep, Ep, jnp.bfloat16)
    bi_p = pad2(params["bi"], 1, Ep, jnp.float32)   # biases stay f32 (post-accum add)
    bh_p = pad2(params["bh"], 1, Ep, jnp.float32)
    bo_p = pad2(params["bo"], 1, Ep, jnp.float32)

    kernel = functools.partial(dmpnn_kernel, num_layer=num_layer)
    per_grp = lambda s: pl.BlockSpec((None,) + s, lambda b: (b, 0, 0))
    shared = lambda s: pl.BlockSpec(s, lambda b: (0,) * len(s))

    args = (f_atoms_p, f_bonds_p, agg_grp, a2b_grp,
            wi_p, bi_p, wh_p, bh_p, wo_a_p, wo_m_p, bo_p)

    flops_per_group = 2 * (
        GB * BFp * Ep                                           # W_i
        + (num_layer - 1) * (GB * GB * Ep + GB * Ep * Ep)       # AGG + W_h / layer
        + GA * GB * Ep                                          # readout gather
        + GA * AFp * Ep + GA * Ep * Ep)                         # W_o
    bytes_accessed = (sum(int(a.size) * a.dtype.itemsize for a in args)
                      + num_groups * GA * Ep * 4)

    out = pl.pallas_call(
        kernel,
        out_shape=jax.ShapeDtypeStruct((num_groups, GA, Ep), jnp.float32),
        grid=(num_groups,),
        in_specs=[
            per_grp((GA, AFp)), per_grp((GB, BFp)),
            per_grp((GB, GB)), per_grp((GA, GB)),
            shared((BFp, Ep)), shared((1, Ep)),
            shared((Ep, Ep)), shared((1, Ep)),
            shared((AFp, Ep)), shared((Ep, Ep)), shared((1, Ep)),
        ],
        out_specs=per_grp((GA, Ep)),
        compiler_params=pltpu.CompilerParams(
            dimension_semantics=("parallel",),         # v7x: 2 TCs split the groups
            vmem_limit_bytes=_vmem_limit_bytes()),     # ~48 MiB v7x / ~96 MiB v5e,v6e
        cost_estimate=pl.CostEstimate(
            flops=num_groups * flops_per_group, transcendentals=0,
            bytes_accessed=int(bytes_accessed)),
    )(*args)

    return out.reshape(Bg, NAp, Ep)[:B, :NA, :E]


if __name__ == "__main__":
    # config: num_atom_features=16, num_bond_features=16, emb_dim=32, num_layer=3
    B, NUM_ATOMS, NUM_BONDS, MAX_NUM_BONDS = 4, 8, 16, 4
    ATOM_FDIM, BOND_FDIM, EMB_DIM, NUM_LAYER = 16, 16, 32, 3

    key = jax.random.PRNGKey(0)
    ks = jax.random.split(key, 8)

    f_atoms = jax.random.normal(ks[0], (B, NUM_ATOMS, ATOM_FDIM), jnp.float32)
    f_bonds = jax.random.normal(ks[1], (B, NUM_BONDS, BOND_FDIM), jnp.float32)
    a2b = jax.random.randint(ks[2], (B, NUM_ATOMS, MAX_NUM_BONDS), 0, NUM_BONDS,
                             dtype=jnp.int32)
    b2a = jax.random.randint(ks[3], (B, NUM_BONDS), 0, NUM_ATOMS, dtype=jnp.int32)
    # Bonds come in (forward, reverse) pairs: rev(2i) = 2i+1, rev(2i+1) = 2i.
    b2revb = jnp.tile(
        jnp.arange(NUM_BONDS, dtype=jnp.int32).reshape(-1, 2)[:, ::-1].reshape(-1),
        (B, 1))
    # TODO(synk): real chemprop uses bond index 0 as a null/padding bond whose
    # message must be masked to zero; mask the scatter before using real data.

    # Deterministic nn.Linear-style parameter init (uniform +-1/sqrt(fan_in)).
    def linear_init(k, fan_in, fan_out):
        bound = 1.0 / float(fan_in) ** 0.5
        kw, kb = jax.random.split(k)
        w = jax.random.uniform(kw, (fan_in, fan_out), jnp.float32, -bound, bound)
        b = jax.random.uniform(kb, (1, fan_out), jnp.float32, -bound, bound)
        return w, b

    wi, bi = linear_init(ks[4], BOND_FDIM, EMB_DIM)            # W_i
    wh, bh = linear_init(ks[5], EMB_DIM, EMB_DIM)              # W_h (atom_messages=False)
    wo, bo = linear_init(ks[6], ATOM_FDIM + EMB_DIM, EMB_DIM)  # W_o
    wo_a, wo_m = wo[:ATOM_FDIM], wo[ATOM_FDIM:]

    params = dict(wi=wi, bi=bi, wh=wh, bh=bh, wo_a=wo_a, wo_m=wo_m, bo=bo)

    forward = jax.jit(functools.partial(dmpnn_forward, num_layer=NUM_LAYER))
    out = jax.block_until_ready(forward(f_atoms, f_bonds, a2b, b2a, b2revb, params))
    assert out.shape == (B, NUM_ATOMS, EMB_DIM)

    # Pure-JAX reference mirroring the PyTorch forward (eval mode).  `lp` marks the
    # points where the kernel feeds bf16 operands to the MXU (f32 accumulation).
    def make_reference(lp):
        def ref_one(fa, fb, a2b_i, b2a_i, b2revb_i):
            inp = lp(fb) @ lp(wi) + bi
            message = jax.nn.relu(inp)
            for _ in range(NUM_LAYER - 1):
                msg = lp(message)
                a_msg = msg[a2b_i].sum(axis=1)
                m = a_msg[b2a_i] - msg[b2revb_i]
                m = lp(m) @ lp(wh) + bh
                message = jax.nn.relu(inp + m)
            a_msg = lp(message)[a2b_i].sum(axis=1)
            return jax.nn.relu(lp(fa) @ lp(wo_a) + lp(a_msg) @ lp(wo_m) + bo)
        return jax.vmap(ref_one)

    lp_bf16 = lambda x: x.astype(jnp.bfloat16).astype(jnp.float32)
    ref_mixed = jax.block_until_ready(
        make_reference(lp_bf16)(f_atoms, f_bonds, a2b, b2a, b2revb))
    ref_f32 = jax.block_until_ready(
        make_reference(lambda x: x)(f_atoms, f_bonds, a2b, b2a, b2revb))

    # 1) Tight check vs. a reference with the same bf16 operand rounding (proves the
    #    AGG folding / grouping / padding / batching are exact transformations).
    err_mixed = float(jnp.max(jnp.abs(out - ref_mixed)))
    assert jnp.allclose(out, ref_mixed, atol=5e-2, rtol=5e-2), (
        f"mixed-precision mismatch, max abs err {err_mixed}")
    # 2) Loose check vs. the exact float32 module semantics (bf16-operand tolerance).
    err_f32 = float(jnp.max(jnp.abs(out - ref_f32)))
    assert jnp.allclose(out, ref_f32, atol=5e-1, rtol=2e-1), (
        f"f32-reference mismatch, max abs err {err_f32}")

    print("KERNEL_OK")
</pallas_src>

<mosaic_0001>
module attributes {stable_mosaic.version = 11 : i64} {
  func.func @dmpnn_kernel(%arg0: i32, %arg1: memref<1x32x128xbf16, #tpu.memory_space<vmem>>, %arg2: memref<1x32x128xbf16, #tpu.memory_space<vmem>>, %arg3: memref<1x32x32xbf16, #tpu.memory_space<vmem>>, %arg4: memref<1x32x32xbf16, #tpu.memory_space<vmem>>, %arg5: memref<128x128xbf16, #tpu.memory_space<vmem>>, %arg6: memref<1x128xf32, #tpu.memory_space<vmem>>, %arg7: memref<128x128xbf16, #tpu.memory_space<vmem>>, %arg8: memref<1x128xf32, #tpu.memory_space<vmem>>, %arg9: memref<128x128xbf16, #tpu.memory_space<vmem>>, %arg10: memref<128x128xbf16, #tpu.memory_space<vmem>>, %arg11: memref<1x128xf32, #tpu.memory_space<vmem>>, %arg12: memref<1x32x128xf32, #tpu.memory_space<vmem>>) attributes {dimension_semantics = [#tpu.dimension_semantics<parallel>], iteration_bounds = array<i64: 2>, scalar_prefetch = 0 : i64, scratch_operands = 0 : i64, tpu.core_type = #tpu.core_type<tc>, window_params = [{transform_indices = @transform_0, window_bounds = array<i64: 1, 32, 128>}, {transform_indices = @transform_1, window_bounds = array<i64: 1, 32, 128>}, {transform_indices = @transform_2, window_bounds = array<i64: 1, 32, 32>}, {transform_indices = @transform_3, window_bounds = array<i64: 1, 32, 32>}, {pipeline_mode = #tpu.pipeline_mode<synchronous>, transform_indices = @transform_4, window_bounds = array<i64: 128, 128>}, {pipeline_mode = #tpu.pipeline_mode<synchronous>, transform_indices = @transform_5, window_bounds = array<i64: 1, 128>}, {pipeline_mode = #tpu.pipeline_mode<synchronous>, transform_indices = @transform_6, window_bounds = array<i64: 128, 128>}, {pipeline_mode = #tpu.pipeline_mode<synchronous>, transform_indices = @transform_7, window_bounds = array<i64: 1, 128>}, {pipeline_mode = #tpu.pipeline_mode<synchronous>, transform_indices = @transform_8, window_bounds = array<i64: 128, 128>}, {pipeline_mode = #tpu.pipeline_mode<synchronous>, transform_indices = @transform_9, window_bounds = array<i64: 128, 128>}, {pipeline_mode = #tpu.pipeline_mode<synchronous>, transform_indices = @transform_10, window_bounds = array<i64: 1, 128>}, {transform_indices = @transform_11, window_bounds = array<i64: 1, 32, 128>}]} {
    %c0 = arith.constant 0 : index
    %c0_0 = arith.constant 0 : index
    %c0_1 = arith.constant 0 : index
    %0 = vector.load %arg2[%c0, %c0_0, %c0_1] : memref<1x32x128xbf16, #tpu.memory_space<vmem>>, vector<1x32x128xbf16>
    %1 = vector.shape_cast %0 : vector<1x32x128xbf16> to vector<32x128xbf16>
    %c0_2 = arith.constant 0 : index
    %c0_3 = arith.constant 0 : index
    %2 = vector.load %arg5[%c0_2, %c0_3] : memref<128x128xbf16, #tpu.memory_space<vmem>>, vector<128x128xbf16>
    %cst = arith.constant dense<0.000000e+00> : vector<32x128xf32>
    %3 = tpu.matmul %1, %2, %cst {dimension_numbers = #tpu.dot_dimension_numbers<[1], [0], [0], [1], [0, 0, 1, 1], [], []>} : vector<32x128xbf16>, vector<128x128xbf16>, vector<32x128xf32> -> vector<32x128xf32>
    %c0_4 = arith.constant 0 : index
    %c0_5 = arith.constant 0 : index
    %4 = vector.load %arg6[%c0_4, %c0_5] : memref<1x128xf32, #tpu.memory_space<vmem>>, vector<1x128xf32>
    %5 = vector.broadcast %4 : vector<1x128xf32> to vector<32x128xf32>
    %6 = arith.addf %3, %5 : vector<32x128xf32>
    %cst_6 = arith.constant 0.000000e+00 : f32
    %7 = vector.broadcast %cst_6 : f32 to vector<32x128xf32>
    %8 = arith.maximumf %6, %7 : vector<32x128xf32>
    %c0_7 = arith.constant 0 : index
    %c0_8 = arith.constant 0 : index
    %c0_9 = arith.constant 0 : index
    %9 = vector.load %arg3[%c0_7, %c0_8, %c0_9] : memref<1x32x32xbf16, #tpu.memory_space<vmem>>, vector<1x32x32xbf16>
    %10 = vector.shape_cast %9 : vector<1x32x32xbf16> to vector<32x32xbf16>
    %c0_10 = arith.constant 0 : index
    %c0_11 = arith.constant 0 : index
    %11 = vector.load %arg7[%c0_10, %c0_11] : memref<128x128xbf16, #tpu.memory_space<vmem>>, vector<128x128xbf16>
    %c0_12 = arith.constant 0 : index
    %c0_13 = arith.constant 0 : index
    %12 = vector.load %arg8[%c0_12, %c0_13] : memref<1x128xf32, #tpu.memory_space<vmem>>, vector<1x128xf32>
    %13 = arith.truncf %8 : vector<32x128xf32> to vector<32x128xbf16>
    %cst_14 = arith.constant dense<0.000000e+00> : vector<32x128xf32>
    %14 = tpu.matmul %10, %13, %cst_14 {dimension_numbers = #tpu.dot_dimension_numbers<[1], [0], [0], [1], [0, 0, 1, 1], [], []>} : vector<32x32xbf16>, vector<32x128xbf16>, vector<32x128xf32> -> vector<32x128xf32>
    %15 = arith.truncf %14 : vector<32x128xf32> to vector<32x128xbf16>
    %cst_15 = arith.constant dense<0.000000e+00> : vector<32x128xf32>
    %16 = tpu.matmul %15, %11, %cst_15 {dimension_numbers = #tpu.dot_dimension_numbers<[1], [0], [0], [1], [0, 0, 1, 1], [], []>} : vector<32x128xbf16>, vector<128x128xbf16>, vector<32x128xf32> -> vector<32x128xf32>
    %17 = vector.broadcast %12 : vector<1x128xf32> to vector<32x128xf32>
    %18 = arith.addf %16, %17 : vector<32x128xf32>
    %19 = arith.addf %6, %18 : vector<32x128xf32>
    %cst_16 = arith.constant 0.000000e+00 : f32
    %20 = vector.broadcast %cst_16 : f32 to vector<32x128xf32>
    %21 = arith.maximumf %19, %20 : vector<32x128xf32>
    %22 = arith.truncf %21 : vector<32x128xf32> to vector<32x128xbf16>
    %cst_17 = arith.constant dense<0.000000e+00> : vector<32x128xf32>
    %23 = tpu.matmul %10, %22, %cst_17 {dimension_numbers = #tpu.dot_dimension_numbers<[1], [0], [0], [1], [0, 0, 1, 1], [], []>} : vector<32x32xbf16>, vector<32x128xbf16>, vector<32x128xf32> -> vector<32x128xf32>
    %24 = arith.truncf %23 : vector<32x128xf32> to vector<32x128xbf16>
    %cst_18 = arith.constant dense<0.000000e+00> : vector<32x128xf32>
    %25 = tpu.matmul %24, %11, %cst_18 {dimension_numbers = #tpu.dot_dimension_numbers<[1], [0], [0], [1], [0, 0, 1, 1], [], []>} : vector<32x128xbf16>, vector<128x128xbf16>, vector<32x128xf32> -> vector<32x128xf32>
    %26 = vector.broadcast %12 : vector<1x128xf32> to vector<32x128xf32>
    %27 = arith.addf %25, %26 : vector<32x128xf32>
    %28 = arith.addf %6, %27 : vector<32x128xf32>
    %cst_19 = arith.constant 0.000000e+00 : f32
    %29 = vector.broadcast %cst_19 : f32 to vector<32x128xf32>
    %30 = arith.maximumf %28, %29 : vector<32x128xf32>
    %c0_20 = arith.constant 0 : index
    %c0_21 = arith.constant 0 : index
    %c0_22 = arith.constant 0 : index
    %31 = vector.load %arg4[%c0_20, %c0_21, %c0_22] : memref<1x32x32xbf16, #tpu.memory_space<vmem>>, vector<1x32x32xbf16>
    %32 = vector.shape_cast %31 : vector<1x32x32xbf16> to vector<32x32xbf16>
    %33 = arith.truncf %30 : vector<32x128xf32> to vector<32x128xbf16>
    %cst_23 = arith.constant dense<0.000000e+00> : vector<32x128xf32>
    %34 = tpu.matmul %32, %33, %cst_23 {dimension_numbers = #tpu.dot_dimension_numbers<[1], [0], [0], [1], [0, 0, 1, 1], [], []>} : vector<32x32xbf16>, vector<32x128xbf16>, vector<32x128xf32> -> vector<32x128xf32>
    %c0_24 = arith.constant 0 : index
    %c0_25 = arith.constant 0 : index
    %c0_26 = arith.constant 0 : index
    %35 = vector.load %arg1[%c0_24, %c0_25, %c0_26] : memref<1x32x128xbf16, #tpu.memory_space<vmem>>, vector<1x32x128xbf16>
    %36 = vector.shape_cast %35 : vector<1x32x128xbf16> to vector<32x128xbf16>
    %c0_27 = arith.constant 0 : index
    %c0_28 = arith.constant 0 : index
    %37 = vector.load %arg9[%c0_27, %c0_28] : memref<128x128xbf16, #tpu.memory_space<vmem>>, vector<128x128xbf16>
    %cst_29 = arith.constant dense<0.000000e+00> : vector<32x128xf32>
    %38 = tpu.matmul %36, %37, %cst_29 {dimension_numbers = #tpu.dot_dimension_numbers<[1], [0], [0], [1], [0, 0, 1, 1], [], []>} : vector<32x128xbf16>, vector<128x128xbf16>, vector<32x128xf32> -> vector<32x128xf32>
    %39 = arith.truncf %34 : vector<32x128xf32> to vector<32x128xbf16>
    %c0_30 = arith.constant 0 : index
    %c0_31 = arith.constant 0 : index
    %40 = vector.load %arg10[%c0_30, %c0_31] : memref<128x128xbf16, #tpu.memory_space<vmem>>, vector<128x128xbf16>
    %cst_32 = arith.constant dense<0.000000e+00> : vector<32x128xf32>
    %41 = tpu.matmul %39, %40, %cst_32 {dimension_numbers = #tpu.dot_dimension_numbers<[1], [0], [0], [1], [0, 0, 1, 1], [], []>} : vector<32x128xbf16>, vector<128x128xbf16>, vector<32x128xf32> -> vector<32x128xf32>
    %42 = arith.addf %38, %41 : vector<32x128xf32>
    %c0_33 = arith.constant 0 : index
    %c0_34 = arith.constant 0 : index
    %43 = vector.load %arg11[%c0_33, %c0_34] : memref<1x128xf32, #tpu.memory_space<vmem>>, vector<1x128xf32>
    %44 = vector.broadcast %43 : vector<1x128xf32> to vector<32x128xf32>
    %45 = arith.addf %42, %44 : vector<32x128xf32>
    %cst_35 = arith.constant 0.000000e+00 : f32
    %46 = vector.broadcast %cst_35 : f32 to vector<32x128xf32>
    %47 = arith.maximumf %45, %46 : vector<32x128xf32>
    %c0_36 = arith.constant 0 : index
    %c0_37 = arith.constant 0 : index
    %c0_38 = arith.constant 0 : index
    %48 = vector.load %arg12[%c0_36, %c0_37, %c0_38] : memref<1x32x128xf32, #tpu.memory_space<vmem>>, vector<1x32x128xf32>
    %49 = vector.shape_cast %48 : vector<1x32x128xf32> to vector<32x128xf32>
    %50 = vector.shape_cast %47 : vector<32x128xf32> to vector<1x32x128xf32>
    tpu.vector_store %arg12[%c0_36, %c0_37, %c0_38], %50 {strides = array<i32>} : memref<1x32x128xf32, #tpu.memory_space<vmem>>, vector<1x32x128xf32>,
    return
  }
  func.func @transform_0(%arg0: i32) -> (i32, i32, i32) {
    %c0_i32 = arith.constant 0 : i32
    %c0_i32_0 = arith.constant 0 : i32
    %c0_i32_1 = arith.constant 0 : i32
    return %arg0, %c0_i32, %c0_i32_0 : i32, i32, i32
  }
  func.func @transform_1(%arg0: i32) -> (i32, i32, i32) {
    %c0_i32 = arith.constant 0 : i32
    %c0_i32_0 = arith.constant 0 : i32
    %c0_i32_1 = arith.constant 0 : i32
    return %arg0, %c0_i32, %c0_i32_0 : i32, i32, i32
  }
  func.func @transform_2(%arg0: i32) -> (i32, i32, i32) {
    %c0_i32 = arith.constant 0 : i32
    %c0_i32_0 = arith.constant 0 : i32
    %c0_i32_1 = arith.constant 0 : i32
    return %arg0, %c0_i32, %c0_i32_0 : i32, i32, i32
  }
  func.func @transform_3(%arg0: i32) -> (i32, i32, i32) {
    %c0_i32 = arith.constant 0 : i32
    %c0_i32_0 = arith.constant 0 : i32
    %c0_i32_1 = arith.constant 0 : i32
    return %arg0, %c0_i32, %c0_i32_0 : i32, i32, i32
  }
  func.func @transform_4(%arg0: i32) -> (i32, i32) {
    %c0_i32 = arith.constant 0 : i32
    %c0_i32_0 = arith.constant 0 : i32
    %c0_i32_1 = arith.constant 0 : i32
    return %c0_i32, %c0_i32_0 : i32, i32
  }
  func.func @transform_5(%arg0: i32) -> (i32, i32) {
    %c0_i32 = arith.constant 0 : i32
    %c0_i32_0 = arith.constant 0 : i32
    %c0_i32_1 = arith.constant 0 : i32
    return %c0_i32, %c0_i32_0 : i32, i32
  }
  func.func @transform_6(%arg0: i32) -> (i32, i32) {
    %c0_i32 = arith.constant 0 : i32
    %c0_i32_0 = arith.constant 0 : i32
    %c0_i32_1 = arith.constant 0 : i32
    return %c0_i32, %c0_i32_0 : i32, i32
  }
  func.func @transform_7(%arg0: i32) -> (i32, i32) {
    %c0_i32 = arith.constant 0 : i32
    %c0_i32_0 = arith.constant 0 : i32
    %c0_i32_1 = arith.constant 0 : i32
    return %c0_i32, %c0_i32_0 : i32, i32
  }
  func.func @transform_8(%arg0: i32) -> (i32, i32) {
    %c0_i32 = arith.constant 0 : i32
    %c0_i32_0 = arith.constant 0 : i32
    %c0_i32_1 = arith.constant 0 : i32
    return %c0_i32, %c0_i32_0 : i32, i32
  }
  func.func @transform_9(%arg0: i32) -> (i32, i32) {
    %c0_i32 = arith.constant 0 : i32
    %c0_i32_0 = arith.constant 0 : i32
    %c0_i32_1 = arith.constant 0 : i32
    return %c0_i32, %c0_i32_0 : i32, i32
  }
  func.func @transform_10(%arg0: i32) -> (i32, i32) {
    %c0_i32 = arith.constant 0 : i32
    %c0_i32_0 = arith.constant 0 : i32
    %c0_i32_1 = arith.constant 0 : i32
    return %c0_i32, %c0_i32_0 : i32, i32
  }
  func.func @transform_11(%arg0: i32) -> (i32, i32, i32) {
    %c0_i32 = arith.constant 0 : i32
    %c0_i32_0 = arith.constant 0 : i32
    %c0_i32_1 = arith.constant 0 : i32
    return %arg0, %c0_i32, %c0_i32_0 : i32, i32, i32
  }
}

</mosaic_0001>

<bundles_post_ra>
// kernel: dmpnn_forward.1
= control target key start
LH: loop header
LB: loop body
LE: loop exit
PB: predicated region body
PF: predicated region fallthrough
CT: control target
= control target key end

     0   :  { %s1399_s17 = smov 0   ;;  %s1566_s0 = inlined_call_operand.vmem [shape: bf16[2,32,128], index: 0, kind: input, shape index: {}]   ;;  %s1567_s1 = inlined_call_operand.vmem [shape: bf16[2,32,128], index: 1, kind: input, shape index: {}]   ;;  %s1568_s2 = inlined_call_operand.vmem [shape: bf16[2,32,32], index: 2, kind: input, shape index: {}]   ;;  %s1569_s3 = inlined_call_operand.vmem [shape: bf16[2,32,32], index: 3, kind: input, shape index: {}]   ;;  %s1570_s4 = inlined_call_operand.vmem [shape: bf16[128,128], index: 4, kind: input, shape index: {}]   ;;  %s1571_s5 = inlined_call_operand.vmem [shape: f32[1,128], index: 5, kind: input, shape index: {}]   ;;  %s1572_s6 = inlined_call_operand.vmem [shape: bf16[128,128], index: 6, kind: input, shape index: {}]   ;;  %s1573_s7 = inlined_call_operand.vmem [shape: f32[1,128], index: 7, kind: input, shape index: {}]   ;;  %s1574_s8 = inlined_call_operand.vmem [shape: bf16[128,128], index: 8, kind: input, shape index: {}]   ;;  %s1575_s9 = inlined_call_operand.vmem [shape: bf16[128,128], index: 9, kind: input, shape index: {}]   ;;  %s1576_s10 = inlined_call_operand.vmem [shape: f32[1,128], index: 10, kind: input, shape index: {}]   ;;  %s1577_s11 = inlined_call_operand.vmem [shape: f32[2,32,128], index: 11, kind: output, shape index: {}]  }
   0x1 LB: > { %s1076_s18 = sadd.s32 4294967295, %s1337_s17   ;;  %p1080_p0 = scmp.ge.s32.totalorder %s1337_s17, 1  ;;  %s1337_s17 = sphi %s1399_s17, %s21_s17  }
   0x2   : > { %p367_p1 = scmp.lt.s32.totalorder %s1337_s17, 3 }
   0x4   : > { %p368_p2 = pnand %p1080_p0, %p367_p1 }
   0x5   : > { %p422_p3 = scmp.lt.s32.totalorder (!%p368_p2), %s1076_s18, 1 }
   0x6   : > { %371 = sbr.rel (%p368_p2) target bundleno = 1119 (0x45f), region = 64 }
   0xb   : > { %v1273_v0 = vld [vmem:[%s1570_s4 + $0x38] sm:$0xff]  ;;  %v1272_v1 = vld [vmem:[%s1570_s4 + $0x30] sm:$0xff]  ;;  %v1271_v2 = vld [vmem:[%s1570_s4 + $0x28] sm:$0xff]  ;;  %s1579_s18 = smov (!%p422_p3, %s1076_s18), 1  ;;  %vm588_vm0 = vcmask 261120  }
   0xc   : > { %532 = vmatpush.bf16.msra.mxu0 %v1273_v0  ;;  %v1270_v3 = vld [vmem:[%s1570_s4 + $0x20] sm:$0xff]  ;;  %v1269_v4 = vld [vmem:[%s1570_s4 + $0x18] sm:$0xff]  ;;  %v1268_v5 = vld [vmem:[%s1570_s4 + $0x10] sm:$0xff]  ;;  %s1431_s14 = sshll.u32 %s1579_s18, 4  ;;  %s1263_s20 = sshll.u32 %s1579_s18, 5 }
   0xd   : > { %v1267_v6 = vld [vmem:[%s1570_s4 + $0x8] sm:$0xff]  ;;  %v1266_v7 = vld [vmem:[%s1570_s4] sm:$0xff]  ;;  %s431_s21 = scalar_lea.vmem %s1567_s1, %s1431_s14  ;;  %v1283_v14 = vld [vmem:[%s1572_s6 + $0x38] sm:$0xff]  ;;  %s436_s13 = scalar_lea.vmem %s1568_s2, %s1431_s14 }
   0xe   : > { %v1264_v8 = vld [vmem:[%s431_s21] sm:$0xff]  ;;  %v1265_v9 = vld [vmem:[%s431_s21 + $0x8] sm:$0xff]  ;;  %667 = vmatpush.bf16.msra.mxu2 %v1283_v14  ;;  %v1282_v17 = vld [vmem:[%s1572_s6 + $0x30] sm:$0xff]  ;;  %s441_s27 = scalar_lea.vmem %s1569_s3, %s1431_s14  ;;  %s426_s29 = scalar_lea.vmem %s1566_s0, %s1431_s14 }
   0xf   : > { %v1328_v13 = vld [vmem:[%s1571_s5] ss:$0 sm:$0xff]  ;;  %v1281_v23 = vld [vmem:[%s1572_s6 + $0x28] sm:$0xff]  ;;  %v1279_v30 = vld [vmem:[%s1572_s6 + $0x18] sm:$0xff]  ;;  %s446_s23 = scalar_lea.vmem %s1577_s11, %s1263_s20 }
  0x10   : > { %533 = vmatpush.bf16.msra.mxu0 %v1272_v1  ;;  %v1280_v27 = vld [vmem:[%s1572_s6 + $0x20] sm:$0xff]  ;;  %v1275_v31 = vld [vmem:[%s436_s13 + $0x8] sm:$0xff]  ;;  %v1278_v32 = vld [vmem:[%s1572_s6 + $0x10] sm:$0xff] }
  0x11   : > { %v1274_v29 = vld [vmem:[%s436_s13] sm:$0xff]  ;;  %v1277_v33 = vld [vmem:[%s1572_s6 + $0x8] sm:$0xff] }
  0x12   : > { %668 = vmatpush.bf16.msra.mxu2 %v1282_v17  ;;  %v1276_v34 = vld [vmem:[%s1572_s6] sm:$0xff] }
  0x13   : > { %v1329_v44 = vld [vmem:[%s1573_s7] ss:$0 sm:$0xff] }
  0x14   : > { %534 = vmatpush.bf16.msra.mxu0 %v1271_v2 }
  0x16   : > { %669 = vmatpush.bf16.msra.mxu2 %v1281_v23 }
  0x18   : > { %535 = vmatpush.bf16.msra.mxu0 %v1270_v3 }
  0x1a   : > { %670 = vmatpush.bf16.msra.mxu2 %v1280_v27 }
  0x1c   : > { %536 = vmatpush.bf16.msra.mxu0 %v1269_v4 }
  0x1e   : > { %671 = vmatpush.bf16.msra.mxu2 %v1279_v30 }
  0x20   : > { %537 = vmatpush.bf16.msra.mxu0 %v1268_v5 }
  0x22   : > { %672 = vmatpush.bf16.msra.mxu2 %v1278_v32 }
  0x24   : > { %538 = vmatpush.bf16.msra.mxu0 %v1267_v6 }
  0x26   : > { %673 = vmatpush.bf16.msra.mxu2 %v1277_v33 }
  0x28   : > { %539 = vmatpush.bf16.msra.mxu0 %v1266_v7 }
  0x2a   : > { %674 = vmatpush.bf16.msra.mxu2 %v1276_v34 }
  0x2b   : > { %540 = vmatmul.bf16.vlgmr.msra.gmra.mxu0 %v1264_v8  ;;  %v1295_v8 = vld [vmem:[%s1574_s8 + $0x38] sm:$0xff] }
  0x2e   : > { %950 = vmatpush.bf16.msrb.mxu2 %v1295_v8 }
  0x3b   : > { %545 = vmatmul.bf16.gmra.mxu0 %v1265_v9  ;;  %v1303_v9 = vld [vmem:[%s1575_s9 + $0x38] sm:$0xff] }
  0x3c   : > { %871 = vmatpush.bf16.msrb.mxu0 %v1303_v9 }
  0xa8   : > { %v541_v10 = vpop.f32.mrf.mxu0 }
  0xa9   : > { %v1455_v20 = vadd.f32 %v1328_v13, %v541_v10 }
  0xab   : > { %v551_v26 = vmax.f32 %v1455_v20, 0.0 }
  0xb0   : > { %v543_v11 = vpop.f32.mrf.mxu0 }
  0xb1   : > { %v1451_v18 = vadd.f32 %v1328_v13, %v543_v11 }
  0xb3   : > { %v552_v25 = vmax.f32 %v1451_v18, 0.0 }
  0xb5   : > { %v576_v28 = vpack.c.bf16 %v552_v25, %v551_v26 }
  0xb8   : > { %v546_v12 = vpop.f32.mrf.mxu0 }
  0xb9   : > { %v1446_v15 = vadd.f32 %v1328_v13, %v546_v12 }
  0xbb   : > { %v553_v21 = vmax.f32 %v1446_v15, 0.0 }
  0xc0   : > { %v548_v16 = vpop.f32.mrf.mxu0 }
  0xc1   : > { %v1453_v19 = vadd.f32 %v1328_v13, %v548_v16  ;;  %v1294_v13 = vld [vmem:[%s1574_s8 + $0x30] sm:$0xff] }
  0xc2   : > { %951 = vmatpush.bf16.msrb.mxu2 %v1294_v13 }
  0xc3   : > { %v554_v22 = vmax.f32 %v1453_v19, 0.0 }
  0xc5   : > { %v577_v24 = vpack.c.bf16 %v554_v22, %v553_v21 }
  0xc7   : > { %601 = vmatpush.bf16.msra.mxu1 %v577_v24  ;;  %v1301_v24 = vld [vmem:[%s1575_s9 + $0x28] sm:$0xff] }
  0xcb   : > { %602 = vmatpush.bf16.msra.mxu1 %v576_v28  ;;  %v1284_v28 = vld [vmem:[%s441_s27] sm:$0xff] }
  0xce   : > { %1139 = vmatmul.msk.bf16.vlgmr.msra.gmra.mxu1 %vm588_vm0, %v1274_v29 }
  0xcf   : > { %717 = vmatpush.bf16.msrb.mxu1 %v1283_v14  ;;  %v1302_v14 = vld [vmem:[%s1575_s9 + $0x30] sm:$0xff] }
  0xd0   : > { %872 = vmatpush.bf16.msrb.mxu0 %v1302_v14 }
  0xd3   : > { %718 = vmatpush.bf16.msrb.mxu1 %v1282_v17 }
  0xd4   : > { %873 = vmatpush.bf16.msrb.mxu0 %v1301_v24 }
  0xd7   : > { %719 = vmatpush.bf16.msrb.mxu1 %v1281_v23  ;;  %v1293_v23 = vld [vmem:[%s1574_s8 + $0x28] sm:$0xff] }
  0xd8   : > { %952 = vmatpush.bf16.msrb.mxu2 %v1293_v23 }
  0xdb   : > { %720 = vmatpush.bf16.msrb.mxu1 %v1280_v27  ;;  %v1300_v27 = vld [vmem:[%s1575_s9 + $0x20] sm:$0xff] }
  0xdc   : > { %874 = vmatpush.bf16.msrb.mxu0 %v1300_v27 }
  0xde   : > { %1140 = vmatmul.msk.bf16.gmra.mxu1 %vm588_vm0, %v1275_v31 }
  0xdf   : > { %721 = vmatpush.bf16.msrb.mxu1 %v1279_v30  ;;  %v1299_v30 = vld [vmem:[%s1575_s9 + $0x18] sm:$0xff] }
  0xe0   : > { %875 = vmatpush.bf16.msrb.mxu0 %v1299_v30 }
  0xe3   : > { %722 = vmatpush.bf16.msrb.mxu1 %v1278_v32  ;;  %v1289_v32 = vld [vmem:[%s1574_s8 + $0x8] sm:$0xff] }
  0xe7   : > { %723 = vmatpush.bf16.msrb.mxu1 %v1277_v33  ;;  %v1285_v33 = vld [vmem:[%s441_s27 + $0x8] sm:$0xff] }
  0xeb   : > { %724 = vmatpush.bf16.msrb.mxu1 %v1276_v34  ;;  %v1298_v34 = vld [vmem:[%s1575_s9 + $0x10] sm:$0xff] }
  0xec   : > { %876 = vmatpush.bf16.msrb.mxu0 %v1298_v34 }
  0xef   : > { %1304 = vmatpush.bf16.msra.mxu1 %v1303_v9 }
  0xf3   : > { %1305 = vmatpush.bf16.msra.mxu1 %v1302_v14 }
  0xf7   : > { %1306 = vmatpush.bf16.msra.mxu1 %v1301_v24 }
  0xfb   : > { %1307 = vmatpush.bf16.msra.mxu1 %v1300_v27 }
  0xff   : > { %1308 = vmatpush.bf16.msra.mxu1 %v1299_v30 }
 0x103   : > { %1309 = vmatpush.bf16.msra.mxu1 %v1298_v34 }
 0x14b   : > { %v604_v35 = vpop.f32.mrf.mxu1 }
 0x153   : > { %v606_v36 = vpop.f32.mrf.mxu1 }
 0x154   : > { %v614_v37 = vpack.c.bf16 %v606_v36, %v604_v35  ;;  %v1288_v35 = vld [vmem:[%s1574_s8] sm:$0xff]  ;;  %v1297_v36 = vld [vmem:[%s1575_s9 + $0x8] sm:$0xff] }
 0x155   : > { %877 = vmatpush.bf16.msrb.mxu0 %v1297_v36  ;;  %1310 = vmatpush.bf16.msra.mxu1 %v1297_v36 }
 0x156   : > { %675 = vmatmul.bf16.vlgmr.msra.gmra.mxu2 %v614_v37  ;;  %v1286_v37 = vld [vmem:[%s426_s29] sm:$0xff] }
 0x15b   : > { %v609_v38 = vpop.f32.mrf.mxu1 }
 0x163   : > { %v611_v39 = vpop.f32.mrf.mxu1 }
 0x164   : > { %v615_v40 = vpack.c.bf16 %v611_v39, %v609_v38  ;;  %v1296_v38 = vld [vmem:[%s1575_s9] sm:$0xff]  ;;  %v1287_v39 = vld [vmem:[%s426_s29 + $0x8] sm:$0xff] }
 0x165   : > { %878 = vmatpush.bf16.msrb.mxu0 %v1296_v38  ;;  %1311 = vmatpush.bf16.msra.mxu1 %v1296_v38 }
 0x166   : > { %680 = vmatmul.bf16.gmra.mxu2 %v615_v40 }
 0x1d9   : > { %v676_v41 = vpop.f32.mrf.mxu2 }
 0x1da   : > { %v677_v48 = vadd.f32 %v1329_v44, %v676_v41 }
 0x1dc   : > { %v686_v53 = vadd.f32 %v677_v48, %v1455_v20 }
 0x1de   : > { %v690_v58 = vmax.f32 %v686_v53, 0.0 }
 0x1e1   : > { %v678_v42 = vpop.f32.mrf.mxu2 }
 0x1e2   : > { %v679_v46 = vadd.f32 %v1329_v44, %v678_v42 }
 0x1e4   : > { %v687_v51 = vadd.f32 %v679_v46, %v1451_v18 }
 0x1e6   : > { %v691_v56 = vmax.f32 %v687_v51, 0.0 }
 0x1e8   : > { %v694_v59 = vpack.c.bf16 %v691_v56, %v690_v58 }
 0x1e9   : > { %v681_v43 = vpop.f32.mrf.mxu2 }
 0x1ea   : > { %v682_v45 = vadd.f32 %v1329_v44, %v681_v43 }
 0x1ec   : > { %v688_v50 = vadd.f32 %v682_v45, %v1446_v15 }
 0x1ee   : > { %v692_v54 = vmax.f32 %v688_v50, 0.0 }
 0x1f1   : > { %v683_v47 = vpop.f32.mrf.mxu2 }
 0x1f2   : > { %v684_v49 = vadd.f32 %v1329_v44, %v683_v47  ;;  %v1330_v47 = vld [vmem:[%s1576_s10] ss:$0 sm:$0xff] }
 0x1f4   : > { %v689_v52 = vadd.f32 %v684_v49, %v1453_v19 }
 0x1f6   : > { %v693_v55 = vmax.f32 %v689_v52, 0.0 }
 0x1f8   : > { %v695_v57 = vpack.c.bf16 %v693_v55, %v692_v54 }
 0x1fa   : > { %702 = vmatpush.bf16.msra.mxu3 %v695_v57 }
 0x1fe   : > { %703 = vmatpush.bf16.msra.mxu3 %v694_v59 }
 0x201   : > { %1173 = vmatmul.msk.bf16.vlgmr.msra.gmra.mxu3 %vm588_vm0, %v1274_v29  ;;  %v1291_v29 = vld [vmem:[%s1574_s8 + $0x18] sm:$0xff] }
 0x211   : > { %1174 = vmatmul.msk.bf16.gmra.mxu3 %vm588_vm0, %v1275_v31  ;;  %v1290_v31 = vld [vmem:[%s1574_s8 + $0x10] sm:$0xff] }
 0x284   : > { %v705_v60 = vpop.f32.mrf.mxu3 }
 0x28c   : > { %v707_v61 = vpop.f32.mrf.mxu3 }
 0x28d   : > { %v715_v62 = vpack.c.bf16 %v707_v61, %v705_v60 }
 0x28f   : > { %725 = vmatmul.bf16.vlgmr.msrb.gmra.mxu1 %v715_v62 }
 0x294   : > { %v710_v63 = vpop.f32.mrf.mxu3 }
 0x29c   : > { %v712_v0 = vpop.f32.mrf.mxu3 }
 0x29d   : > { %v716_v1 = vpack.c.bf16 %v712_v0, %v710_v63 }
 0x29f   : > { %730 = vmatmul.bf16.gmra.mxu1 %v716_v1 }
 0x30c   : > { %v726_v2 = vpop.f32.mrf.mxu1 }
 0x30d   : > { %v727_v10 = vadd.f32 %v1329_v44, %v726_v2 }
 0x30f   : > { %v736_v21 = vadd.f32 %v727_v10, %v1455_v20 }
 0x314   : > { %v728_v3 = vpop.f32.mrf.mxu1 }
 0x315   : > { %v729_v6 = vadd.f32 %v1329_v44, %v728_v3 }
 0x317   : > { %v737_v16 = vadd.f32 %v729_v6, %v1451_v18  ;;  %v740_v18 = vmax.f32 %v736_v21, 0.0 }
 0x319   : > { %v741_v25 = vmax.f32 %v737_v16, 0.0 }
 0x31b   : > { %v748_v20 = vpack.c.bf16 %v741_v25, %v740_v18 }
 0x31c   : > { %v731_v4 = vpop.f32.mrf.mxu1 }
 0x31d   : > { %v732_v5 = vadd.f32 %v1329_v44, %v731_v4 }
 0x31f   : > { %v738_v11 = vadd.f32 %v732_v5, %v1446_v15 }
 0x321   : > { %v742_v15 = vmax.f32 %v738_v11, 0.0 }
 0x324   : > { %v733_v7 = vpop.f32.mrf.mxu1 }
 0x325   : > { %v734_v12 = vadd.f32 %v1329_v44, %v733_v7 }
 0x327   : > { %v739_v17 = vadd.f32 %v734_v12, %v1453_v19  ;;  %v1292_v19 = vld [vmem:[%s1574_s8 + $0x20] sm:$0xff] }
 0x328   : > { %953 = vmatpush.bf16.msrb.mxu2 %v1292_v19 }
 0x329   : > { %v743_v22 = vmax.f32 %v739_v17, 0.0 }
 0x32b   : > { %v749_v26 = vpack.c.bf16 %v743_v22, %v742_v15 }
 0x32c   : > { %954 = vmatpush.bf16.msrb.mxu2 %v1291_v29 }
 0x32d   : > { %772 = vmatpush.bf16.msrb.mxu3 %v749_v26 }
 0x330   : > { %955 = vmatpush.bf16.msrb.mxu2 %v1290_v31 }
 0x331   : > { %773 = vmatpush.bf16.msrb.mxu3 %v748_v20 }
 0x334   : > { %1183 = vmatmul.msk.bf16.vlgmr.msrb.gmra.mxu3 %vm588_vm0, %v1284_v28  ;;  %956 = vmatpush.bf16.msrb.mxu2 %v1289_v32 }
 0x335   : > { %1312 = vmatpush.bf16.msra.mxu3 %v1295_v8 }
 0x338   : > { %957 = vmatpush.bf16.msrb.mxu2 %v1288_v35 }
 0x339   : > { %1313 = vmatpush.bf16.msra.mxu3 %v1294_v13 }
 0x33b   : > { %958 = vmatmul.bf16.vlgmr.msrb.gmra.mxu2 %v1286_v37 }
 0x33d   : > { %1314 = vmatpush.bf16.msra.mxu3 %v1293_v23 }
 0x341   : > { %1315 = vmatpush.bf16.msra.mxu3 %v1292_v19 }
 0x344   : > { %1184 = vmatmul.msk.bf16.gmra.mxu3 %vm588_vm0, %v1285_v33 }
 0x345   : > { %1316 = vmatpush.bf16.msra.mxu3 %v1291_v29 }
 0x349   : > { %1317 = vmatpush.bf16.msra.mxu3 %v1290_v31 }
 0x34d   : > { %1318 = vmatpush.bf16.msra.mxu3 %v1289_v32 }
 0x351   : > { %1319 = vmatpush.bf16.msra.mxu3 %v1288_v35 }
 0x354   : > { %963 = vmatmul.bf16.vlgmr.msra.gmra.mxu3 %v1287_v39 }
 0x3b7   : > { %v775_v40 = vpop.f32.mrf.mxu3 }
 0x3be   : > { %v959_v46 = vpop.f32.mrf.mxu2 }
 0x3bf   : > { %v777_v41 = vpop.f32.mrf.mxu3 }
 0x3c0   : > { %v805_v42 = vpack.c.bf16 %v777_v41, %v775_v40 }
 0x3c2   : > { %879 = vmatmul.bf16.vlgmr.msrb.gmra.mxu0 %v805_v42 }
 0x3c6   : > { %v961_v52 = vpop.f32.mrf.mxu2 }
 0x3c7   : > { %v780_v43 = vpop.f32.mrf.mxu3 }
 0x3cf   : > { %v782_v44 = vpop.f32.mrf.mxu3 }
 0x3d0   : > { %v806_v45 = vpack.c.bf16 %v782_v44, %v780_v43 }
 0x3d2   : > { %884 = vmatmul.bf16.vlgmr.msra.gmra.mxu1 %v806_v45 }
 0x3d7   : > { %v964_v57 = vpop.f32.mrf.mxu3 }
 0x3df   : > { %v966_v63 = vpop.f32.mrf.mxu3 }
 0x43f   : > { %v880_v48 = vpop.f32.mrf.mxu0 }
 0x440   : > { %v960_v49 = vadd.f32 %v959_v46, %v880_v48 }
 0x442   : > { %v973_v50 = vadd.f32 %v1330_v47, %v960_v49 }
 0x444   : > { %v977_v51 = vmax.f32 %v973_v50, 0.0 }
 0x446   : > { %981 = vst [vmem:[%s446_s23] sm:$0xff] %v977_v51 }
 0x447   : > { %v882_v53 = vpop.f32.mrf.mxu0 }
 0x448   : > { %v962_v54 = vadd.f32 %v961_v52, %v882_v53 }
 0x44a   : > { %v974_v55 = vadd.f32 %v1330_v47, %v962_v54 }
 0x44c   : > { %v978_v56 = vmax.f32 %v974_v55, 0.0 }
 0x44e   : > { %982 = vst [vmem:[%s446_s23 + $0x8] sm:$0xff] %v978_v56 }
 0x44f   : > { %v885_v58 = vpop.f32.mrf.mxu1 }
 0x450   : > { %v965_v59 = vadd.f32 %v964_v57, %v885_v58 }
 0x452   : > { %v975_v60 = vadd.f32 %v1330_v47, %v965_v59 }
 0x454   : > { %v979_v61 = vmax.f32 %v975_v60, 0.0 }
 0x456   : > { %983 = vst [vmem:[%s446_s23 + $0x10] sm:$0xff] %v979_v61 }
 0x457   : > { %v887_v62 = vpop.f32.mrf.mxu1 }
 0x458   : > { %v967_v0 = vadd.f32 %v966_v63, %v887_v62 }
 0x45a   : > { %v976_v1 = vadd.f32 %v1330_v47, %v967_v0 }
 0x45c   : > { %v980_v2 = vmax.f32 %v976_v1, 0.0 }
 0x45e   : > { %984 = vst [vmem:[%s446_s23 + $0x18] sm:$0xff] %v980_v2 }
 0x45f PF: > { %s21_s17 = sadd.s32 1, %s1337_s17  }
 0x460   : > { %p18_p4 = scmp.ge.s32.totalorder %s21_s17, 4  }
 0x462   :  { %20 = sbr.rel (!%p18_p4) target bundleno = 1 (0x1), region = 103 }

</bundles_post_ra>
